<compile_context>
chip_gen: v7x
topology: tpu7x:2x2x1
jax: 0.10.0
libtpu: 0.0.40
codegen_flags: <defaults>
</compile_context>

<pallas_src>
import jax
import jax.numpy as jnp
from jax.experimental import pallas as pl
from jax.experimental.pallas import tpu as pltpu

LANE = 128
MAX_BATCH_TILE = 512  # keeps double-buffered f32 x tiles small even on v7x (64 MiB VMEM)


def _round_up(n, m):
    return ((n + m - 1) // m) * m


def ann_kernel(x_ref, w1_ref, b1_ref, w2_ref, b2_ref, o_ref):
    # GEMM 1: bf16 MXU matmul over the padded K=1024 contraction, f32 accumulate.
    h = jnp.dot(x_ref[...].astype(jnp.bfloat16), w1_ref[...],
                preferred_element_type=jnp.float32)
    # Bias + ReLU epilogue in f32 on the VPU.
    h = jnp.maximum(h + b1_ref[...], 0.0)                     # (TB, Hp) f32
    # GEMM 2: keep h and W2 in f32 -- MXU slot has huge slack, no cast pass needed.
    o = jnp.dot(h, w2_ref[...], preferred_element_type=jnp.float32)
    o_ref[...] = (o + b2_ref[...]).astype(o_ref.dtype)


def prepare_params(w1, b1, w2, b2):
    """One-time parameter prep (do NOT call per forward):
      * transpose PyTorch (out, in) weights to (in, out),
      * zero-pad the contraction dim D_in -> Kp (multiple of 128) and the lane
        dims H -> Hp, D_out -> Dp (multiples of 128),
      * W1 stored bf16 (first GEMM), W2 stored f32 (second GEMM), biases f32 2-D.
    Returns (w1_p, b1_p, w2_p, b2_p, Kp, D_out)."""
    H, D_in = w1.shape
    D_out = w2.shape[0]
    Kp = _round_up(D_in, LANE)
    Hp = _round_up(H, LANE)
    Dp = _round_up(D_out, LANE)

    w1_p = jnp.zeros((Kp, Hp), jnp.bfloat16).at[:D_in, :H].set(w1.T.astype(jnp.bfloat16))
    b1_p = jnp.zeros((1, Hp), jnp.float32).at[:, :H].set(b1.astype(jnp.float32))
    w2_p = jnp.zeros((Hp, Dp), jnp.float32).at[:H, :D_out].set(w2.T.astype(jnp.float32))
    b2_p = jnp.zeros((1, Dp), jnp.float32).at[:, :D_out].set(b2.astype(jnp.float32))
    return w1_p, b1_p, w2_p, b2_p, Kp, D_out


def pad_input(x, kp):
    """Producer-side, one-time zero-pad of x's feature dim to Kp (NOT per call
    if the upstream pipeline can emit padded activations directly)."""
    B, D_in = x.shape
    if D_in == kp:
        return x
    return jnp.zeros((B, kp), x.dtype).at[:, :D_in].set(x)


def ann_forward(x_pad, w1_p, b1_p, w2_p, b2_p):
    """x_pad: (B, Kp) float32, feature dim already zero-padded to Kp.
    Returns the PADDED output (B, Dp); the consumer slices [:, :D_out] lazily."""
    B, Kp = x_pad.shape
    Hp = w1_p.shape[1]
    Dp = w2_p.shape[1]

    # Batch tile: one tile at small B; capped so v7x VMEM stays comfortable.
    TB = min(_round_up(B, 8), MAX_BATCH_TILE)
    Bp = _round_up(B, TB)
    if Bp != B:
        x_pad = jnp.zeros((Bp, Kp), x_pad.dtype).at[:B].set(x_pad)

    grid = (Bp // TB,)

    flops = 2 * Bp * Kp * Hp + 2 * Bp * Hp * Dp
    bytes_accessed = (Bp * Kp * 4                      # x (f32)
                      + w1_p.size * 2 + w2_p.size * 4  # weights, read once (resident)
                      + b1_p.size * 4 + b2_p.size * 4
                      + Bp * Dp * 4)                   # output

    out_padded = pl.pallas_call(
        ann_kernel,
        out_shape=jax.ShapeDtypeStruct((Bp, Dp), jnp.float32),
        grid=grid,
        in_specs=[
            pl.BlockSpec((TB, Kp), lambda i: (i, 0)),   # x: tiled over batch
            pl.BlockSpec((Kp, Hp), lambda i: (0, 0)),   # W1: VMEM-resident across steps
            pl.BlockSpec((1, Hp), lambda i: (0, 0)),    # b1: resident
            pl.BlockSpec((Hp, Dp), lambda i: (0, 0)),   # W2: resident
            pl.BlockSpec((1, Dp), lambda i: (0, 0)),    # b2: resident
        ],
        out_specs=pl.BlockSpec((TB, Dp), lambda i: (i, 0)),
        compiler_params=pltpu.CompilerParams(
            dimension_semantics=("parallel",)),          # shard batch tiles across v7x's 2 TCs
        cost_estimate=pl.CostEstimate(
            flops=flops, transcendentals=0, bytes_accessed=bytes_accessed),
    )(x_pad, w1_p, b1_p, w2_p, b2_p)

    if Bp != B:
        out_padded = out_padded[:B]
    return out_padded


if __name__ == "__main__":
    # Shapes from the script: x = torch.randn(64, 1000), ANN(D_in=1000, H=100, D_out=10)
    B, D_in, H, D_out = 64, 1000, 100, 10

    key = jax.random.PRNGKey(0)
    kx, kw1, kb1, kw2, kb2 = jax.random.split(key, 5)

    x = jax.random.normal(kx, (B, D_in), dtype=jnp.float32)

    # Deterministic parameter init (uniform, PyTorch-Linear-style bounds).
    bound1 = 1.0 / (D_in ** 0.5)
    w1 = jax.random.uniform(kw1, (H, D_in), jnp.float32, -bound1, bound1)
    b1 = jax.random.uniform(kb1, (H,), jnp.float32, -bound1, bound1)
    bound2 = 1.0 / (H ** 0.5)
    w2 = jax.random.uniform(kw2, (D_out, H), jnp.float32, -bound2, bound2)
    b2 = jax.random.uniform(kb2, (D_out,), jnp.float32, -bound2, bound2)

    # --- One-time setup (never on the per-call path) -------------------------
    w1_p, b1_p, w2_p, b2_p, Kp, d_out = prepare_params(w1, b1, w2, b2)
    x_pad = pad_input(x, Kp)          # producer emits K-padded activations once

    # --- Forward --------------------------------------------------------------
    out_padded = ann_forward(x_pad, w1_p, b1_p, w2_p, b2_p)
    jax.block_until_ready(out_padded)

    # Consumer-side lazy slice of the padded lane dim (kernel itself returns (B, 128)).
    out = out_padded[:, :d_out]

    # Cross-check against plain f32 JAX reference (tolerance for bf16 first GEMM).
    ref = jnp.maximum(x @ w1.T + b1, 0.0) @ w2.T + b2
    assert out.shape == (B, D_out)
    assert jnp.allclose(out, ref, atol=3e-2, rtol=3e-2), \
        float(jnp.max(jnp.abs(out - ref)))
    # Padded lanes of the output must be exactly the (padded-zero) bias, i.e. 0.
    assert jnp.allclose(out_padded[:, d_out:], 0.0, atol=1e-6)

    print("KERNEL_OK")
</pallas_src>

<mosaic_0001>
module attributes {stable_mosaic.version = 11 : i64} {
  func.func @ann_kernel(%arg0: i32, %arg1: memref<64x1024xf32, #tpu.memory_space<vmem>>, %arg2: memref<1024x128xbf16, #tpu.memory_space<vmem>>, %arg3: memref<1x128xf32, #tpu.memory_space<vmem>>, %arg4: memref<128x128xf32, #tpu.memory_space<vmem>>, %arg5: memref<1x128xf32, #tpu.memory_space<vmem>>, %arg6: memref<64x128xf32, #tpu.memory_space<vmem>>) attributes {dimension_semantics = [#tpu.dimension_semantics<parallel>], iteration_bounds = array<i64: 1>, scalar_prefetch = 0 : i64, scratch_operands = 0 : i64, tpu.core_type = #tpu.core_type<tc>, window_params = [{transform_indices = @transform_0, window_bounds = array<i64: 64, 1024>}, {pipeline_mode = #tpu.pipeline_mode<synchronous>, transform_indices = @transform_1, window_bounds = array<i64: 1024, 128>}, {pipeline_mode = #tpu.pipeline_mode<synchronous>, transform_indices = @transform_2, window_bounds = array<i64: 1, 128>}, {pipeline_mode = #tpu.pipeline_mode<synchronous>, transform_indices = @transform_3, window_bounds = array<i64: 128, 128>}, {pipeline_mode = #tpu.pipeline_mode<synchronous>, transform_indices = @transform_4, window_bounds = array<i64: 1, 128>}, {transform_indices = @transform_5, window_bounds = array<i64: 64, 128>}]} {
    %c0 = arith.constant 0 : index
    %c0_0 = arith.constant 0 : index
    %0 = vector.load %arg1[%c0, %c0_0] : memref<64x1024xf32, #tpu.memory_space<vmem>>, vector<64x1024xf32>
    %1 = arith.truncf %0 : vector<64x1024xf32> to vector<64x1024xbf16>
    %c0_1 = arith.constant 0 : index
    %c0_2 = arith.constant 0 : index
    %2 = vector.load %arg2[%c0_1, %c0_2] : memref<1024x128xbf16, #tpu.memory_space<vmem>>, vector<1024x128xbf16>
    %cst = arith.constant dense<0.000000e+00> : vector<64x128xf32>
    %3 = tpu.matmul %1, %2, %cst {dimension_numbers = #tpu.dot_dimension_numbers<[1], [0], [0], [1], [0, 0, 1, 1], [], []>} : vector<64x1024xbf16>, vector<1024x128xbf16>, vector<64x128xf32> -> vector<64x128xf32>
    %c0_3 = arith.constant 0 : index
    %c0_4 = arith.constant 0 : index
    %4 = vector.load %arg3[%c0_3, %c0_4] : memref<1x128xf32, #tpu.memory_space<vmem>>, vector<1x128xf32>
    %5 = vector.broadcast %4 : vector<1x128xf32> to vector<64x128xf32>
    %6 = arith.addf %3, %5 : vector<64x128xf32>
    %cst_5 = arith.constant 0.000000e+00 : f32
    %7 = vector.broadcast %cst_5 : f32 to vector<64x128xf32>
    %8 = arith.maximumf %6, %7 : vector<64x128xf32>
    %c0_6 = arith.constant 0 : index
    %c0_7 = arith.constant 0 : index
    %9 = vector.load %arg4[%c0_6, %c0_7] : memref<128x128xf32, #tpu.memory_space<vmem>>, vector<128x128xf32>
    %cst_8 = arith.constant dense<0.000000e+00> : vector<64x128xf32>
    %10 = tpu.matmul %8, %9, %cst_8 {dimension_numbers = #tpu.dot_dimension_numbers<[1], [0], [0], [1], [0, 0, 1, 1], [], []>} : vector<64x128xf32>, vector<128x128xf32>, vector<64x128xf32> -> vector<64x128xf32>
    %c0_9 = arith.constant 0 : index
    %c0_10 = arith.constant 0 : index
    %11 = vector.load %arg5[%c0_9, %c0_10] : memref<1x128xf32, #tpu.memory_space<vmem>>, vector<1x128xf32>
    %12 = vector.broadcast %11 : vector<1x128xf32> to vector<64x128xf32>
    %13 = arith.addf %10, %12 : vector<64x128xf32>
    %c0_11 = arith.constant 0 : index
    %c0_12 = arith.constant 0 : index
    %14 = vector.load %arg6[%c0_11, %c0_12] : memref<64x128xf32, #tpu.memory_space<vmem>>, vector<64x128xf32>
    tpu.vector_store %arg6[%c0_11, %c0_12], %13 {strides = array<i32>} : memref<64x128xf32, #tpu.memory_space<vmem>>, vector<64x128xf32>,
    return
  }
  func.func @transform_0(%arg0: i32) -> (i32, i32) {
    %c0_i32 = arith.constant 0 : i32
    %c0_i32_0 = arith.constant 0 : i32
    return %arg0, %c0_i32 : i32, i32
  }
  func.func @transform_1(%arg0: i32) -> (i32, i32) {
    %c0_i32 = arith.constant 0 : i32
    %c0_i32_0 = arith.constant 0 : i32
    %c0_i32_1 = arith.constant 0 : i32
    return %c0_i32, %c0_i32_0 : i32, i32
  }
  func.func @transform_2(%arg0: i32) -> (i32, i32) {
    %c0_i32 = arith.constant 0 : i32
    %c0_i32_0 = arith.constant 0 : i32
    %c0_i32_1 = arith.constant 0 : i32
    return %c0_i32, %c0_i32_0 : i32, i32
  }
  func.func @transform_3(%arg0: i32) -> (i32, i32) {
    %c0_i32 = arith.constant 0 : i32
    %c0_i32_0 = arith.constant 0 : i32
    %c0_i32_1 = arith.constant 0 : i32
    return %c0_i32, %c0_i32_0 : i32, i32
  }
  func.func @transform_4(%arg0: i32) -> (i32, i32) {
    %c0_i32 = arith.constant 0 : i32
    %c0_i32_0 = arith.constant 0 : i32
    %c0_i32_1 = arith.constant 0 : i32
    return %c0_i32, %c0_i32_0 : i32, i32
  }
  func.func @transform_5(%arg0: i32) -> (i32, i32) {
    %c0_i32 = arith.constant 0 : i32
    %c0_i32_0 = arith.constant 0 : i32
    return %arg0, %c0_i32 : i32, i32
  }
}

</mosaic_0001>

<bundles_post_ra>
// kernel: tpu_custom_call.1
= control target key start
LH: loop header
LB: loop body
LE: loop exit
PB: predicated region body
PF: predicated region fallthrough
CT: control target
= control target key end

     0   :  { %10 = vsyncpa [#allocation3], 0  ;;  %s1729_s0 = inlined_call_operand.hbm [shape: f32[64,1024], index: 0, kind: input, shape index: {}]   ;;  %s1730_s1 = inlined_call_operand.hbm [shape: bf16[1024,128], index: 1, kind: input, shape index: {}]   ;;  %s1731_s2 = inlined_call_operand.vmem [shape: f32[1,128], index: 2, kind: input, shape index: {}]   ;;  %s1732_s3 = inlined_call_operand.hbm [shape: f32[128,128], index: 3, kind: input, shape index: {}]   ;;  %s1733_s4 = inlined_call_operand.vmem [shape: f32[1,128], index: 4, kind: input, shape index: {}]   ;;  %s1734_s5 = inlined_call_operand.hbm [shape: f32[64,128], index: 5, kind: output, shape index: {}]  }
   0x1   :  { %11 = vsyncpa [#allocation6], 0 }
   0x2   :  { %12 = vsyncpa [#allocation4], 0  ;;  %s1609_s18 = smov [#allocation5]   ;;  %s1515_s22 = scalar_lea.hbm %s1730_s1, 8192 }
   0x3   :  { %s30_s19 = sshll.u32 %s1609_s18, 4  ;;  %p1516_p0 = scmp.ne.s32.totalorder %s1730_s1, %s1515_s22  ;;  %s31_s19 = int_to_ptr.vmem [resolvable:$true] %s30_s19 }
   0x4   :  { %p1519_p1 = scmp.lt.u32.totalorder %s1515_s22, %s1730_s1 }
   0x6   :  { %p1521_p2 = pnand %p1519_p1, %p1516_p0 }
   0x8   :  { %1524 = shalt.err (!%p1521_p2)
}
   0x9   :  { %s1525_s27 = scalar_lea.vmem %s31_s19, 8192  ;;  %p1530_p4 = scmp.lt.s32.totalorder %s31_s19, %s31_s19 }
   0xa   :  { %p1526_p3 = scmp.ne.s32.totalorder %s31_s19, %s1525_s27  ;;  %p1531_p5 = scmp.lt.s32.totalorder %s1525_s27, %s1525_s27 }
   0xc   :  { %p1532_p6 = por %p1531_p5, %p1530_p4 }
   0xe   :  { %p1533_p7 = pnand %p1532_p6, %p1526_p3 }
  0x10   :  { %1536 = shalt.err (!%p1533_p7)
}
  0x11   :  { %s1610_s28 = smov 64   ;;  %s1611_s29 = smov 4  }
  0x12   :  { %36 = dma.hbm_to_vmem [thread:$0]  %s1730_s1, 8192, %s31_s19, [#allocation6], %s1610_s28, %s1610_s28, %s1611_s29  }
  0x13   :  { %s1612_s7 = smov [#allocation2]   ;;  %s1537_s11 = scalar_lea.hbm %s1729_s0, 8192 }
  0x14   :  { %s18_s8 = sshll.u32 %s1612_s7, 4  ;;  %p1538_p8 = scmp.ne.s32.totalorder %s1729_s0, %s1537_s11  ;;  %s19_s8 = int_to_ptr.vmem [resolvable:$true] %s18_s8 }
  0x15   :  { %p1541_p9 = scmp.lt.u32.totalorder %s1537_s11, %s1729_s0 }
  0x17   :  { %p1543_p10 = pnand %p1541_p9, %p1538_p8 }
  0x19   :  { %1546 = shalt.err (!%p1543_p10)
}
  0x1a   :  { %s1547_s16 = scalar_lea.vmem %s19_s8, 8192  ;;  %p1552_p12 = scmp.lt.s32.totalorder %s19_s8, %s19_s8 }
  0x1b   :  { %p1548_p11 = scmp.ne.s32.totalorder %s19_s8, %s1547_s16  ;;  %p1553_p13 = scmp.lt.s32.totalorder %s1547_s16, %s1547_s16 }
  0x1d   :  { %p1554_p0 = por %p1553_p13, %p1552_p12 }
  0x1f   :  { %p1555_p1 = pnand %p1554_p0, %p1548_p11 }
  0x21   :  { %1558 = shalt.err (!%p1555_p1)
}
  0x22   :  { %s1613_s1 = smov 1024   ;;  %s1614_s19 = smov [#allocation7]  }
  0x23   :  { %24 = dma.hbm_to_vmem [thread:$0]  %s1729_s0, 8192, %s19_s8, [#allocation3], %s1613_s1, %s1613_s1, %s1610_s28  }
  0x24   :  { %s44_s20 = sshll.u32 %s1614_s19, 4  ;;  %s1559_s23 = scalar_lea.hbm %s1732_s3, 2048  ;;  %s45_s20 = int_to_ptr.vmem [resolvable:$true] %s44_s20 }
  0x25   :  { %p1560_p2 = scmp.ne.s32.totalorder %s1732_s3, %s1559_s23  ;;  %p1563_p3 = scmp.lt.u32.totalorder %s1559_s23, %s1732_s3 }
  0x27   :  { %p1565_p4 = pnand %p1563_p3, %p1560_p2 }
  0x29   :  { %1568 = shalt.err (!%p1565_p4)
}
  0x2a   :  { %s1569_s29 = scalar_lea.vmem %s45_s20, 2048  ;;  %p1574_p6 = scmp.lt.s32.totalorder %s45_s20, %s45_s20 }
  0x2b   :  { %p1570_p5 = scmp.ne.s32.totalorder %s45_s20, %s1569_s29  ;;  %p1575_p7 = scmp.lt.s32.totalorder %s1569_s29, %s1569_s29 }
  0x2d   :  { %p1576_p8 = por %p1575_p7, %p1574_p6 }
  0x2f   :  { %p1577_p9 = pnand %p1576_p8, %p1570_p5 }
  0x31   :  { %1580 = shalt.err (!%p1577_p9)
}
  0x32   :  { %s1615_s0 = smov 128   ;;  %s1616_s28 = smov 8  }
  0x33   :  { %50 = dma.hbm_to_vmem [thread:$0]  %s1732_s3, 2048, %s45_s20, [#allocation6], %s1615_s0, %s1615_s0, %s1616_s28  }
  0x34   :  { %1603 = dma.done.wait [#allocation3], 8192  }
  0x35   :  { %1604 = vsyncadd [#allocation3], 4294959104 }
  0x36   :  { %1605 = dma.done.wait [#allocation6], 10240  }
  0x37   :  { %1606 = vsyncadd [#allocation6], 4294957056  ;;  %v1451_v0 = vld [vmem:[#allocation5 + $0x40] sm:$0xff]   ;;  %v1455_v4 = vld [vmem:[#allocation5 + $0x48] sm:$0xff]   ;;  %s1617_s9 = smov [#allocation8]  }
  0x38   :  { %v1452_v1 = vld [vmem:[#allocation5 + $0xc0] sm:$0xff]   ;;  %1166 = vmatprep.subr.bf16.mxu0 %v1451_v0  ;;  %v1456_v5 = vld [vmem:[#allocation5 + $0xc8] sm:$0xff]   ;;  %v1459_v8 = vld [vmem:[#allocation5 + $0x50] sm:$0xff]  }
  0x39   :  { %v1453_v2 = vld [vmem:[#allocation5] sm:$0xff]   ;;  %1206 = vmatprep.subr.bf16.mxu1 %v1452_v1  ;;  %v1457_v6 = vld [vmem:[#allocation5 + $0x8] sm:$0xff]   ;;  %v1460_v9 = vld [vmem:[#allocation5 + $0xd0] sm:$0xff]  }
  0x3a   :  { %v1454_v3 = vld [vmem:[#allocation5 + $0x80] sm:$0xff]   ;;  %1167 = vmatpush3.bf16.msra.mxu0 %v1453_v2  ;;  %v1458_v7 = vld [vmem:[#allocation5 + $0x88] sm:$0xff]   ;;  %v1461_v10 = vld [vmem:[#allocation5 + $0x10] sm:$0xff]  }
  0x3b   :  { %1207 = vmatpush3.bf16.msra.mxu1 %v1454_v3  ;;  %1168 = vmatprep.subr.bf16.mxu0 %v1455_v4  ;;  %v1462_v11 = vld [vmem:[#allocation5 + $0x90] sm:$0xff]   ;;  %v1463_v12 = vld [vmem:[#allocation5 + $0x58] sm:$0xff]   ;;  %v1467_v16 = vld [vmem:[#allocation5 + $0x60] sm:$0xff]  }
  0x3c   :  { %1208 = vmatprep.subr.bf16.mxu1 %v1456_v5  ;;  %v1464_v13 = vld [vmem:[#allocation5 + $0xd8] sm:$0xff]   ;;  %v1468_v17 = vld [vmem:[#allocation5 + $0xe0] sm:$0xff]   ;;  %v1471_v20 = vld [vmem:[#allocation5 + $0x68] sm:$0xff]  }
  0x3d   :  { %v1465_v14 = vld [vmem:[#allocation5 + $0x18] sm:$0xff]   ;;  %v1469_v18 = vld [vmem:[#allocation5 + $0x20] sm:$0xff]   ;;  %v1472_v21 = vld [vmem:[#allocation5 + $0xe8] sm:$0xff]  }
  0x3e   :  { %1169 = vmatpush3.bf16.msra.mxu0 %v1457_v6  ;;  %v1466_v15 = vld [vmem:[#allocation5 + $0x98] sm:$0xff]   ;;  %v1470_v19 = vld [vmem:[#allocation5 + $0xa0] sm:$0xff]   ;;  %v1473_v22 = vld [vmem:[#allocation5 + $0x28] sm:$0xff]  }
  0x3f   :  { %1209 = vmatpush3.bf16.msra.mxu1 %v1458_v7  ;;  %1170 = vmatprep.subr.bf16.mxu0 %v1459_v8  ;;  %v1474_v23 = vld [vmem:[#allocation5 + $0xa8] sm:$0xff]   ;;  %v1475_v24 = vld [vmem:[#allocation5 + $0x70] sm:$0xff]   ;;  %v1479_v28 = vld [vmem:[#allocation5 + $0x78] sm:$0xff]  }
  0x40   :  { %1210 = vmatprep.subr.bf16.mxu1 %v1460_v9  ;;  %v1476_v25 = vld [vmem:[#allocation5 + $0xf0] sm:$0xff]   ;;  %v1480_v29 = vld [vmem:[#allocation5 + $0xf8] sm:$0xff]   ;;  %v64_v32 = vld [vmem:[#allocation2 + $0x8] sm:$0xff] }
  0x41   :  { %v1477_v26 = vld [vmem:[#allocation5 + $0x30] sm:$0xff]   ;;  %v1481_v30 = vld [vmem:[#allocation5 + $0x38] sm:$0xff]   ;;  %v72_v33 = vld [vmem:[#allocation2 + $0x48] sm:$0xff] }
  0x42   :  { %1171 = vmatpush3.bf16.msra.mxu0 %v1461_v10  ;;  %v1478_v27 = vld [vmem:[#allocation5 + $0xb0] sm:$0xff]   ;;  %v1482_v31 = vld [vmem:[#allocation5 + $0xb8] sm:$0xff]   ;;  %v128_v35 = vpack.c.bf16 %v72_v33, %v64_v32  ;;  %v63_v37 = vld [vmem:[#allocation2] sm:$0xff] }
  0x43   :  { %1211 = vmatpush3.bf16.msra.mxu1 %v1462_v11  ;;  %1172 = vmatprep.subr.bf16.mxu0 %v1463_v12  ;;  %v66_v34 = vld [vmem:[#allocation2 + $0x18] sm:$0xff]  ;;  %v71_v38 = vld [vmem:[#allocation2 + $0x40] sm:$0xff]  ;;  %v65_v41 = vld [vmem:[#allocation2 + $0x10] sm:$0xff] }
  0x44   :  { %1212 = vmatprep.subr.bf16.mxu1 %v1464_v13  ;;  %v74_v36 = vld [vmem:[#allocation2 + $0x58] sm:$0xff]  ;;  %v127_v40 = vpack.c.bf16 %v71_v38, %v63_v37  ;;  %v73_v42 = vld [vmem:[#allocation2 + $0x50] sm:$0xff]  ;;  %710 = vmatprep.mubr.bf16.mxu0 %v128_v35  ;;  %v1483_v44 = vld [vmem:[#allocation5 + $0x140] sm:$0xff]  }
  0x45   :  { %v130_v39 = vpack.c.bf16 %v74_v36, %v66_v34  ;;  %v129_v43 = vpack.c.bf16 %v73_v42, %v65_v41  ;;  %v1484_v45 = vld [vmem:[#allocation5 + $0x1c0] sm:$0xff]   ;;  %v1487_v48 = vld [vmem:[#allocation5 + $0x148] sm:$0xff]   ;;  %v82_v54 = vld [vmem:[#allocation2 + $0x98] sm:$0xff] }
  0x46   :  { %1173 = vmatpush3.bf16.msra.mxu0 %v1465_v14  ;;  %v1485_v46 = vld [vmem:[#allocation5 + $0x100] sm:$0xff]   ;;  %v1488_v49 = vld [vmem:[#allocation5 + $0x1c8] sm:$0xff]   ;;  %v90_v55 = vld [vmem:[#allocation2 + $0xd8] sm:$0xff] }
  0x47   :  { %1213 = vmatpush3.bf16.msra.mxu1 %v1466_v15  ;;  %1174 = vmatprep.subr.bf16.mxu0 %v1467_v16  ;;  %v1486_v47 = vld [vmem:[#allocation5 + $0x180] sm:$0xff]   ;;  %v1489_v50 = vld [vmem:[#allocation5 + $0x108] sm:$0xff]   ;;  %v138_v57 = vpack.c.bf16 %v90_v55, %v82_v54  ;;  %v81_v60 = vld [vmem:[#allocation2 + $0x90] sm:$0xff] }
  0x48   :  { %1214 = vmatprep.subr.bf16.mxu1 %v1468_v17  ;;  %775 = vmatprep.mubr.bf16.mxu1 %v130_v39  ;;  %v1490_v51 = vld [vmem:[#allocation5 + $0x188] sm:$0xff]   ;;  %v79_v58 = vld [vmem:[#allocation2 + $0x80] sm:$0xff]  ;;  %v89_v62 = vld [vmem:[#allocation2 + $0xd0] sm:$0xff] }
  0x49   :  { %v80_v52 = vld [vmem:[#allocation2 + $0x88] sm:$0xff]  ;;  %v87_v59 = vld [vmem:[#allocation2 + $0xc0] sm:$0xff]  ;;  %v137_v63 = vpack.c.bf16 %v89_v62, %v81_v60  ;;  %v1491_v0 = vld [vmem:[#allocation5 + $0x150] sm:$0xff]  }
  0x4a   :  { %1175 = vmatpush3.bf16.msra.mxu0 %v1469_v18  ;;  %v88_v53 = vld [vmem:[#allocation2 + $0xc8] sm:$0xff]  ;;  %v135_v61 = vpack.c.bf16 %v87_v59, %v79_v58  ;;  %v1492_v1 = vld [vmem:[#allocation5 + $0x1d0] sm:$0xff]   ;;  %v1495_v4 = vld [vmem:[#allocation5 + $0x158] sm:$0xff]  }
  0x4b   :  { %1215 = vmatpush3.bf16.msra.mxu1 %v1470_v19  ;;  %1176 = vmatprep.subr.bf16.mxu0 %v1471_v20  ;;  %v136_v56 = vpack.c.bf16 %v88_v53, %v80_v52  ;;  %v1493_v2 = vld [vmem:[#allocation5 + $0x110] sm:$0xff]   ;;  %v1496_v5 = vld [vmem:[#allocation5 + $0x1d8] sm:$0xff]   ;;  %v96_v8 = vld [vmem:[#allocation2 + $0x108] sm:$0xff] }
  0x4c   :  { %1216 = vmatprep.subr.bf16.mxu1 %v1472_v21  ;;  %v1494_v3 = vld [vmem:[#allocation5 + $0x190] sm:$0xff]   ;;  %v1497_v6 = vld [vmem:[#allocation5 + $0x118] sm:$0xff]   ;;  %v104_v9 = vld [vmem:[#allocation2 + $0x148] sm:$0xff] }
  0x4d   :  { %v1498_v7 = vld [vmem:[#allocation5 + $0x198] sm:$0xff]   ;;  %v144_v10 = vpack.c.bf16 %v104_v9, %v96_v8  ;;  %v95_v13 = vld [vmem:[#allocation2 + $0x100] sm:$0xff]  ;;  %v97_v16 = vld [vmem:[#allocation2 + $0x110] sm:$0xff] }
  0x4e   :  { %1177 = vmatpush3.bf16.msra.mxu0 %v1473_v22  ;;  %v98_v11 = vld [vmem:[#allocation2 + $0x118] sm:$0xff]  ;;  %v103_v15 = vld [vmem:[#allocation2 + $0x140] sm:$0xff]  ;;  %v105_v17 = vld [vmem:[#allocation2 + $0x150] sm:$0xff] }
  0x4f   :  { %1217 = vmatpush3.bf16.msra.mxu1 %v1474_v23  ;;  %1178 = vmatprep.subr.bf16.mxu0 %v1475_v24  ;;  %v106_v12 = vld [vmem:[#allocation2 + $0x158] sm:$0xff]  ;;  %v143_v18 = vpack.c.bf16 %v103_v15, %v95_v13  ;;  %v145_v19 = vpack.c.bf16 %v105_v17, %v97_v16  ;;  %v1499_v20 = vld [vmem:[#allocation5 + $0x160] sm:$0xff]   ;;  %v1503_v24 = vld [vmem:[#allocation5 + $0x168] sm:$0xff]  }
  0x50   :  { %1218 = vmatprep.subr.bf16.mxu1 %v1476_v25  ;;  %v146_v14 = vpack.c.bf16 %v106_v12, %v98_v11  ;;  %v1500_v21 = vld [vmem:[#allocation5 + $0x1e0] sm:$0xff]   ;;  %v1504_v25 = vld [vmem:[#allocation5 + $0x1e8] sm:$0xff]   ;;  %v122_v32 = vld [vmem:[#allocation2 + $0x1d8] sm:$0xff] }
  0x51   :  { %v1501_v22 = vld [vmem:[#allocation5 + $0x120] sm:$0xff]   ;;  %v113_v37 = vld [vmem:[#allocation2 + $0x190] sm:$0xff]  ;;  %v84_v59 = vld [vmem:[#allocation2 + $0xa8] sm:$0xff] }
  0x52   :  { %1179 = vmatpush3.bf16.msra.mxu0 %v1477_v26  ;;  %v1502_v23 = vld [vmem:[#allocation5 + $0x1a0] sm:$0xff]   ;;  %v1505_v26 = vld [vmem:[#allocation5 + $0x128] sm:$0xff]   ;;  %v121_v38 = vld [vmem:[#allocation2 + $0x1d0] sm:$0xff] }
  0x53   :  { %1219 = vmatpush3.bf16.msra.mxu1 %v1478_v27  ;;  %1180 = vmatprep.subr.bf16.mxu0 %v1479_v28  ;;  %v1506_v27 = vld [vmem:[#allocation5 + $0x1a8] sm:$0xff]   ;;  %v111_v33 = vld [vmem:[#allocation2 + $0x180] sm:$0xff]  ;;  %v153_v39 = vpack.c.bf16 %v121_v38, %v113_v37  ;;  %v1508_v41 = vld [vmem:[#allocation5 + $0x1f0] sm:$0xff]  }
  0x54   :  { %1220 = vmatprep.subr.bf16.mxu1 %v1480_v29  ;;  %v112_v28 = vld [vmem:[#allocation2 + $0x188] sm:$0xff]  ;;  %v119_v34 = vld [vmem:[#allocation2 + $0x1c0] sm:$0xff]  ;;  %v1509_v42 = vld [vmem:[#allocation5 + $0x130] sm:$0xff]  }
  0x55   :  { %v120_v29 = vld [vmem:[#allocation2 + $0x1c8] sm:$0xff]  ;;  %v151_v36 = vpack.c.bf16 %v119_v34, %v111_v33  ;;  %v67_v54 = vld [vmem:[#allocation2 + $0x20] sm:$0xff]  ;;  %v77_v58 = vld [vmem:[#allocation2 + $0x70] sm:$0xff] }
  0x56   :  { %1181 = vmatpush3.bf16.msra.mxu0 %v1481_v30  ;;  %v114_v30 = vld [vmem:[#allocation2 + $0x198] sm:$0xff]  ;;  %v75_v55 = vld [vmem:[#allocation2 + $0x60] sm:$0xff]  ;;  %v92_v60 = vld [vmem:[#allocation2 + $0xe8] sm:$0xff] }
  0x57   :  { %1221 = vmatpush3.bf16.msra.mxu1 %v1482_v31  ;;  %1246 = vmatprep.subr.bf16.mxu0 %v1483_v44  ;;  %v152_v31 = vpack.c.bf16 %v120_v29, %v112_v28  ;;  %v154_v35 = vpack.c.bf16 %v122_v32, %v114_v30  ;;  %v1511_v44 = vld [vmem:[#allocation5 + $0x178] sm:$0xff]   ;;  %v140_v62 = vpack.c.bf16 %v92_v60, %v84_v59  ;;  %v107_v15 = vld [vmem:[#allocation2 + $0x160] sm:$0xff]  ;;  %v101_v16 = vld [vmem:[#allocation2 + $0x130] sm:$0xff] }
  0x58   :  { %1286 = vmatprep.subr.bf16.mxu1 %v1484_v45  ;;  %v1512_v45 = vld [vmem:[#allocation5 + $0x1f8] sm:$0xff]   ;;  %v109_v17 = vld [vmem:[#allocation2 + $0x170] sm:$0xff]  ;;  %v946_v32 = vld [vmem:[#allocation7] sm:$0xff] }
  0x59   :  { %711 = vmatmul.mubr.bf16.vlgmr.msra.gmra.mrb[0].mxu0 %v127_v40  ;;  %v1507_v40 = vld [vmem:[#allocation5 + $0x170] sm:$0xff]   ;;  %v102_v8 = vld [vmem:[#allocation2 + $0x138] sm:$0xff]  ;;  %v947_v33 = vld [vmem:[#allocation7 + $0x8] sm:$0xff] }
  0x5a   :  { %776 = vmatmul.mubr.bf16.vlgmr.msra.gmra.mrb[0].mxu1 %v129_v43  ;;  %1247 = vmatpush3.bf16.msra.mxu0 %v1485_v46  ;;  %v1510_v43 = vld [vmem:[#allocation5 + $0x1b0] sm:$0xff]   ;;  %v1513_v46 = vld [vmem:[#allocation5 + $0x138] sm:$0xff]   ;;  %v1394_v34 = vpack.c.bf16 %v947_v33, %v946_v32  ;;  %v950_v38 = vld [vmem:[#allocation7 + $0x20] sm:$0xff] }
  0x5b   :  { %1287 = vmatpush3.bf16.msra.mxu1 %v1486_v47  ;;  %1248 = vmatprep.subr.bf16.mxu0 %v1487_v48  ;;  %v1514_v47 = vld [vmem:[#allocation5 + $0x1b8] sm:$0xff]   ;;  %v68_v48 = vld [vmem:[#allocation2 + $0x28] sm:$0xff]  ;;  %v117_v28 = vld [vmem:[#allocation2 + $0x1b0] sm:$0xff] }
  0x5c   :  { %1288 = vmatprep.subr.bf16.mxu1 %v1488_v49  ;;  %718 = vmatprep.mubr.bf16.mxu0 %v136_v56  ;;  %v76_v49 = vld [vmem:[#allocation2 + $0x68] sm:$0xff]  ;;  %v69_v56 = vld [vmem:[#allocation2 + $0x30] sm:$0xff]  ;;  %v110_v9 = vld [vmem:[#allocation2 + $0x178] sm:$0xff] }
  0x5d   :  { %783 = vmatprep.mubr.bf16.mxu1 %v138_v57  ;;  %v132_v52 = vpack.c.bf16 %v76_v49, %v68_v48  ;;  %v131_v57 = vpack.c.bf16 %v75_v55, %v67_v54  ;;  %v150_v13 = vpack.c.bf16 %v110_v9, %v102_v8  ;;  %v125_v29 = vld [vmem:[#allocation2 + $0x1f0] sm:$0xff]  ;;  %v957_v48 = vld [vmem:[#allocation7 + $0x58] sm:$0xff] }
  0x5e   :  { %1249 = vmatpush3.bf16.msra.mxu0 %v1489_v50  ;;  %v70_v50 = vld [vmem:[#allocation2 + $0x38] sm:$0xff] }
  0x5f   :  { %1289 = vmatpush3.bf16.msra.mxu1 %v1490_v51  ;;  %1250 = vmatprep.subr.bf16.mxu0 %v1491_v0  ;;  %v78_v51 = vld [vmem:[#allocation2 + $0x78] sm:$0xff] }
  0x60   :  { %1290 = vmatprep.subr.bf16.mxu1 %v1492_v1  ;;  %v134_v53 = vpack.c.bf16 %v78_v51, %v70_v50  ;;  %v94_v0 = vld [vmem:[#allocation2 + $0xf8] sm:$0xff]  ;;  %v958_v50 = vld [vmem:[#allocation7 + $0x60] sm:$0xff]  ;;  %v959_v51 = vld [vmem:[#allocation7 + $0x68] sm:$0xff] }
  0x61   :  { %719 = vmatmul.mubr.bf16.gmra.mrb[4].mxu0 %v135_v61  ;;  %v133_v61 = vpack.c.bf16 %v77_v58, %v69_v56  ;;  %v961_v54 = vld [vmem:[#allocation7 + $0x78] sm:$0xff]  ;;  %v1100_v58 = vld [vmem:[%s1731_s2] ss:$0 sm:$0xff] }
  0x62   :  { %784 = vmatmul.mubr.bf16.gmra.mrb[4].mxu1 %v137_v63  ;;  %1251 = vmatpush3.bf16.msra.mxu0 %v1493_v2  ;;  %v86_v63 = vld [vmem:[#allocation2 + $0xb8] sm:$0xff]  ;;  %v83_v2 = vld [vmem:[#allocation2 + $0xa0] sm:$0xff] }
  0x63   :  { %1291 = vmatpush3.bf16.msra.mxu1 %v1494_v3  ;;  %1252 = vmatprep.subr.bf16.mxu0 %v1495_v4  ;;  %v142_v1 = vpack.c.bf16 %v94_v0, %v86_v63  ;;  %v91_v3 = vld [vmem:[#allocation2 + $0xe0] sm:$0xff]  ;;  %v85_v4 = vld [vmem:[#allocation2 + $0xb0] sm:$0xff] }
  0x64   :  { %1292 = vmatprep.subr.bf16.mxu1 %v1496_v5  ;;  %726 = vmatprep.mubr.bf16.mxu0 %v144_v10  ;;  %v93_v5 = vld [vmem:[#allocation2 + $0xf0] sm:$0xff]  ;;  %v139_v10 = vpack.c.bf16 %v91_v3, %v83_v2 }
  0x65   :  { %791 = vmatprep.mubr.bf16.mxu1 %v146_v14  ;;  %v141_v11 = vpack.c.bf16 %v93_v5, %v85_v4  ;;  %v99_v14 = vld [vmem:[#allocation2 + $0x120] sm:$0xff] }
  0x66   :  { %1253 = vmatpush3.bf16.msra.mxu0 %v1497_v6  ;;  %v100_v6 = vld [vmem:[#allocation2 + $0x128] sm:$0xff] }
  0x67   :  { %1293 = vmatpush3.bf16.msra.mxu1 %v1498_v7  ;;  %1254 = vmatprep.subr.bf16.mxu0 %v1499_v20  ;;  %v108_v7 = vld [vmem:[#allocation2 + $0x168] sm:$0xff]  ;;  %v118_v20 = vld [vmem:[#allocation2 + $0x1b8] sm:$0xff] }
  0x68   :  { %1294 = vmatprep.subr.bf16.mxu1 %v1500_v21  ;;  %v148_v12 = vpack.c.bf16 %v108_v7, %v100_v6  ;;  %v126_v21 = vld [vmem:[#allocation2 + $0x1f8] sm:$0xff] }
  0x69   :  { %727 = vmatmul.mubr.bf16.gmra.mrb[8].mxu0 %v143_v18  ;;  %v116_v18 = vld [vmem:[#allocation2 + $0x1a8] sm:$0xff] }
  0x6a   :  { %792 = vmatmul.mubr.bf16.gmra.mrb[8].mxu1 %v145_v19  ;;  %1255 = vmatpush3.bf16.msra.mxu0 %v1501_v22  ;;  %v124_v19 = vld [vmem:[#allocation2 + $0x1e8] sm:$0xff]  ;;  %v147_v22 = vpack.c.bf16 %v107_v15, %v99_v14 }
  0x6b   :  { %1295 = vmatpush3.bf16.msra.mxu1 %v1502_v23  ;;  %1256 = vmatprep.subr.bf16.mxu0 %v1503_v24  ;;  %v149_v23 = vpack.c.bf16 %v109_v17, %v101_v16  ;;  %v156_v24 = vpack.c.bf16 %v124_v19, %v116_v18 }
  0x6c   :  { %1296 = vmatprep.subr.bf16.mxu1 %v1504_v25  ;;  %734 = vmatprep.mubr.bf16.mxu0 %v152_v31  ;;  %v158_v25 = vpack.c.bf16 %v126_v21, %v118_v20  ;;  %v157_v31 = vpack.c.bf16 %v125_v29, %v117_v28 }
  0x6d   :  { %799 = vmatprep.mubr.bf16.mxu1 %v154_v35  ;;  %v948_v35 = vld [vmem:[#allocation7 + $0x10] sm:$0xff] }
  0x6e   :  { %1257 = vmatpush3.bf16.msra.mxu0 %v1505_v26  ;;  %v115_v26 = vld [vmem:[#allocation2 + $0x1a0] sm:$0xff] }
  0x6f   :  { %1297 = vmatpush3.bf16.msra.mxu1 %v1506_v27  ;;  %1258 = vmatprep.subr.bf16.mxu0 %v1507_v40  ;;  %v123_v27 = vld [vmem:[#allocation2 + $0x1e0] sm:$0xff] }
  0x70   :  { %1298 = vmatprep.subr.bf16.mxu1 %v1508_v41  ;;  %v155_v30 = vpack.c.bf16 %v123_v27, %v115_v26  ;;  %v952_v41 = vld [vmem:[#allocation7 + $0x30] sm:$0xff] }
  0x71   :  { %735 = vmatmul.mubr.bf16.gmra.mrb[12].mxu0 %v151_v36  ;;  %v949_v36 = vld [vmem:[#allocation7 + $0x18] sm:$0xff] }
  0x72   :  { %800 = vmatmul.mubr.bf16.gmra.mrb[12].mxu1 %v153_v39  ;;  %1259 = vmatpush3.bf16.msra.mxu0 %v1509_v42  ;;  %v1398_v37 = vpack.c.bf16 %v949_v36, %v948_v35  ;;  %v951_v39 = vld [vmem:[#allocation7 + $0x28] sm:$0xff]  ;;  %v953_v42 = vld [vmem:[#allocation7 + $0x38] sm:$0xff] }
  0x73   :  { %1299 = vmatpush3.bf16.msra.mxu1 %v1510_v43  ;;  %1260 = vmatprep.subr.bf16.mxu0 %v1511_v44  ;;  %v1402_v40 = vpack.c.bf16 %v951_v39, %v950_v38  ;;  %v1406_v43 = vpack.c.bf16 %v953_v42, %v952_v41  ;;  %v954_v44 = vld [vmem:[#allocation7 + $0x40] sm:$0xff] }
  0x74   :  { %1300 = vmatprep.subr.bf16.mxu1 %v1512_v45  ;;  %840 = vmatprep.mubr.bf16.mxu0 %v132_v52  ;;  %v955_v45 = vld [vmem:[#allocation7 + $0x48] sm:$0xff]  ;;  %v1418_v52 = vpack.c.bf16 %v959_v51, %v958_v50 }
  0x75   :  { %905 = vmatprep.mubr.bf16.mxu1 %v134_v53  ;;  %v960_v53 = vld [vmem:[#allocation7 + $0x70] sm:$0xff] }
  0x76   :  { %1261 = vmatpush3.bf16.msra.mxu0 %v1513_v46  ;;  %v1410_v46 = vpack.c.bf16 %v955_v45, %v954_v44  ;;  %v1422_v55 = vpack.c.bf16 %v961_v54, %v960_v53 }
  0x77   :  { %1301 = vmatpush3.bf16.msra.mxu1 %v1514_v47  ;;  %1395 = vmatprep.subr.bf16.mxu0 %v1394_v34  ;;  %v956_v47 = vld [vmem:[#allocation7 + $0x50] sm:$0xff] }
  0x78   :  { %1426 = vmatprep.subr.bf16.mxu1 %v1394_v34  ;;  %v1414_v49 = vpack.c.bf16 %v957_v48, %v956_v47 }
  0x79   :  { %841 = vmatmul.mubr.bf16.vlgmr.msra.gmra.mrb[16].mxu0 %v131_v57 }
  0x7a   :  { %906 = vmatmul.mubr.bf16.vlgmr.msra.gmra.mrb[16].mxu1 %v133_v61  ;;  %848 = vmatprep.mubr.bf16.mxu0 %v140_v62 }
  0x7b   :  { %913 = vmatprep.mubr.bf16.mxu1 %v142_v1  ;;  %1397 = vmatpush3.bf16.msra.mxu0 %v1394_v34 }
  0x7c   :  { %1434 = vmatpush3.bf16.msra.mxu1 %v1394_v34  ;;  %1399 = vmatprep.subr.bf16.mxu0 %v1398_v37 }
  0x7d   :  { %1427 = vmatprep.subr.bf16.mxu1 %v1398_v37 }
  0x7f   :  { %1401 = vmatpush3.bf16.msra.mxu0 %v1398_v37 }
  0x80   :  { %1435 = vmatpush3.bf16.msra.mxu1 %v1398_v37  ;;  %1403 = vmatprep.subr.bf16.mxu0 %v1402_v40 }
  0x81   :  { %849 = vmatmul.mubr.bf16.gmra.mrb[20].mxu0 %v139_v10  ;;  %1428 = vmatprep.subr.bf16.mxu1 %v1402_v40 }
  0x82   :  { %914 = vmatmul.mubr.bf16.gmra.mrb[20].mxu1 %v141_v11  ;;  %856 = vmatprep.mubr.bf16.mxu0 %v148_v12 }
  0x83   :  { %921 = vmatprep.mubr.bf16.mxu1 %v150_v13  ;;  %1405 = vmatpush3.bf16.msra.mxu0 %v1402_v40 }
  0x84   :  { %1436 = vmatpush3.bf16.msra.mxu1 %v1402_v40  ;;  %1407 = vmatprep.subr.bf16.mxu0 %v1406_v43 }
  0x85   :  { %1429 = vmatprep.subr.bf16.mxu1 %v1406_v43 }
  0x87   :  { %1409 = vmatpush3.bf16.msra.mxu0 %v1406_v43 }
  0x88   :  { %1437 = vmatpush3.bf16.msra.mxu1 %v1406_v43  ;;  %1411 = vmatprep.subr.bf16.mxu0 %v1410_v46 }
  0x89   :  { %857 = vmatmul.mubr.bf16.gmra.mrb[24].mxu0 %v147_v22  ;;  %1430 = vmatprep.subr.bf16.mxu1 %v1410_v46 }
  0x8a   :  { %922 = vmatmul.mubr.bf16.gmra.mrb[24].mxu1 %v149_v23  ;;  %864 = vmatprep.mubr.bf16.mxu0 %v156_v24 }
  0x8b   :  { %929 = vmatprep.mubr.bf16.mxu1 %v158_v25  ;;  %1413 = vmatpush3.bf16.msra.mxu0 %v1410_v46 }
  0x8c   :  { %1438 = vmatpush3.bf16.msra.mxu1 %v1410_v46  ;;  %1415 = vmatprep.subr.bf16.mxu0 %v1414_v49 }
  0x8d   :  { %1431 = vmatprep.subr.bf16.mxu1 %v1414_v49 }
  0x8f   :  { %1417 = vmatpush3.bf16.msra.mxu0 %v1414_v49 }
  0x90   :  { %1439 = vmatpush3.bf16.msra.mxu1 %v1414_v49  ;;  %1419 = vmatprep.subr.bf16.mxu0 %v1418_v52 }
  0x91   :  { %865 = vmatmul.mubr.bf16.gmra.mrb[28].mxu0 %v155_v30  ;;  %1432 = vmatprep.subr.bf16.mxu1 %v1418_v52 }
  0x92   :  { %930 = vmatmul.mubr.bf16.gmra.mrb[28].mxu1 %v157_v31 }
  0x93   :  { %1421 = vmatpush3.bf16.msra.mxu0 %v1418_v52 }
  0x94   :  { %1440 = vmatpush3.bf16.msra.mxu1 %v1418_v52  ;;  %1423 = vmatprep.subr.bf16.mxu0 %v1422_v55 }
  0x95   :  { %1433 = vmatprep.subr.bf16.mxu1 %v1422_v55 }
  0x97   :  { %1425 = vmatpush3.bf16.msra.mxu0 %v1422_v55 }
  0x98   :  { %1441 = vmatpush3.bf16.msra.mxu1 %v1422_v55 }
 0x12c   :  { %v1182_v56 = vpop.f32.mrb[0].mxu0 }
 0x12d   :  { %v1222_v57 = vpop.f32.mrb[0].mxu1  ;;  %v1183_v59 = vpop.f32.mrb[1].mxu0 }
 0x12e   :  { %v1184_v60 = vadd.f32 %v1183_v59, %v1182_v56  ;;  %v1223_v61 = vpop.f32.mrb[1].mxu1  ;;  %v1185_v62 = vpop.f32.mrb[2].mxu0 }
 0x12f   :  { %v1224_v63 = vadd.f32 %v1223_v61, %v1222_v57  ;;  %v1225_v0 = vpop.f32.mrb[2].mxu1  ;;  %v1186_v1 = vpop.f32.mrb[3].mxu0 }
 0x130   :  { %v713_v2 = vadd.f32 %v1184_v60, %v1100_v58  ;;  %v1187_v3 = vadd.f32 %v1186_v1, %v1185_v62  ;;  %v1226_v4 = vpop.f32.mrb[3].mxu1 }
 0x131   :  { %v1227_v5 = vadd.f32 %v1226_v4, %v1225_v0 }
 0x132   :  { %v778_v6 = vadd.f32 %v1224_v63, %v713_v2  ;;  %v716_v7 = vadd.f32 %v1187_v3, %v1100_v58 }
 0x134   :  { %v1690_v8 = vadd.f32 %v1227_v5, %v716_v7  ;;  %v1188_v9 = vpop.f32.mrb[4].mxu0 }
 0x135   :  { %v1228_v10 = vpop.f32.mrb[4].mxu1  ;;  %v1189_v11 = vpop.f32.mrb[5].mxu0 }
 0x136   :  { %v1190_v12 = vadd.f32 %v1189_v11, %v1188_v9  ;;  %v1229_v13 = vpop.f32.mrb[5].mxu1  ;;  %v1191_v14 = vpop.f32.mrb[6].mxu0 }
 0x137   :  { %v1230_v15 = vadd.f32 %v1229_v13, %v1228_v10  ;;  %v1231_v16 = vpop.f32.mrb[6].mxu1  ;;  %v1192_v17 = vpop.f32.mrb[7].mxu0 }
 0x138   :  { %v721_v18 = vadd.f32 %v1190_v12, %v1100_v58  ;;  %v1193_v19 = vadd.f32 %v1192_v17, %v1191_v14  ;;  %v1232_v20 = vpop.f32.mrb[7].mxu1 }
 0x139   :  { %v1233_v21 = vadd.f32 %v1232_v20, %v1231_v16 }
 0x13a   :  { %v1692_v22 = vadd.f32 %v1230_v15, %v721_v18  ;;  %v724_v23 = vadd.f32 %v1193_v19, %v1100_v58 }
 0x13c   :  { %v1694_v24 = vadd.f32 %v1233_v21, %v724_v23  ;;  %v1194_v25 = vpop.f32.mrb[8].mxu0 }
 0x13d   :  { %v1234_v26 = vpop.f32.mrb[8].mxu1  ;;  %v1195_v27 = vpop.f32.mrb[9].mxu0 }
 0x13e   :  { %v1235_v28 = vpop.f32.mrb[9].mxu1  ;;  %v1196_v29 = vadd.f32 %v1195_v27, %v1194_v25  ;;  %v1197_v31 = vpop.f32.mrb[10].mxu0 }
 0x13f   :  { %v1236_v30 = vadd.f32 %v1235_v28, %v1234_v26  ;;  %v1237_v32 = vpop.f32.mrb[10].mxu1  ;;  %v1198_v33 = vpop.f32.mrb[11].mxu0 }
 0x140   :  { %v1238_v34 = vpop.f32.mrb[11].mxu1  ;;  %v729_v35 = vadd.f32 %v1196_v29, %v1100_v58  ;;  %v1199_v36 = vadd.f32 %v1198_v33, %v1197_v31 }
 0x141   :  { %v1239_v37 = vadd.f32 %v1238_v34, %v1237_v32 }
 0x142   :  { %v1696_v38 = vadd.f32 %v1236_v30, %v729_v35  ;;  %v732_v39 = vadd.f32 %v1199_v36, %v1100_v58 }
 0x144   :  { %v1698_v40 = vadd.f32 %v1239_v37, %v732_v39  ;;  %v1200_v41 = vpop.f32.mrb[12].mxu0 }
 0x145   :  { %v1240_v42 = vpop.f32.mrb[12].mxu1  ;;  %v1201_v43 = vpop.f32.mrb[13].mxu0 }
 0x146   :  { %v1202_v44 = vadd.f32 %v1201_v43, %v1200_v41  ;;  %v1241_v45 = vpop.f32.mrb[13].mxu1  ;;  %v1203_v46 = vpop.f32.mrb[14].mxu0 }
 0x147   :  { %v1242_v47 = vadd.f32 %v1241_v45, %v1240_v42  ;;  %v1243_v48 = vpop.f32.mrb[14].mxu1  ;;  %v1204_v49 = vpop.f32.mrb[15].mxu0 }
 0x148   :  { %v737_v50 = vadd.f32 %v1202_v44, %v1100_v58  ;;  %v1205_v51 = vadd.f32 %v1204_v49, %v1203_v46  ;;  %v1244_v52 = vpop.f32.mrb[15].mxu1 }
 0x149   :  { %v1245_v53 = vadd.f32 %v1244_v52, %v1243_v48 }
 0x14a   :  { %v1700_v54 = vadd.f32 %v1242_v47, %v737_v50  ;;  %v740_v55 = vadd.f32 %v1205_v51, %v1100_v58 }
 0x14c   :  { %v1702_v56 = vadd.f32 %v1245_v53, %v740_v55  ;;  %v1262_v57 = vpop.f32.mrb[16].mxu0 }
 0x14d   :  { %v1302_v59 = vpop.f32.mrb[16].mxu1  ;;  %v1263_v60 = vpop.f32.mrb[17].mxu0 }
 0x14e   :  { %v1264_v61 = vadd.f32 %v1263_v60, %v1262_v57  ;;  %v1303_v62 = vpop.f32.mrb[17].mxu1  ;;  %v1265_v63 = vpop.f32.mrb[18].mxu0 }
 0x14f   :  { %v1304_v0 = vadd.f32 %v1303_v62, %v1302_v59  ;;  %v1305_v1 = vpop.f32.mrb[18].mxu1  ;;  %v1266_v2 = vpop.f32.mrb[19].mxu0 }
 0x150   :  { %v843_v3 = vadd.f32 %v1264_v61, %v778_v6  ;;  %v1267_v4 = vadd.f32 %v1266_v2, %v1265_v63  ;;  %v1306_v5 = vpop.f32.mrb[19].mxu1 }
 0x151   :  { %v1307_v7 = vadd.f32 %v1306_v5, %v1305_v1 }
 0x152   :  { %v908_v9 = vadd.f32 %v1304_v0, %v843_v3  ;;  %v846_v10 = vadd.f32 %v1267_v4, %v1690_v8  ;;  %v1165_v4 = vld [vmem:[%s1733_s4] ss:$0 sm:$0xff]  ;;  %s1087_s4 = sshll.u32 %s1617_s9, 4  ;;  %s1088_s4 = int_to_ptr.vmem [resolvable:$true] %s1087_s4 }
 0x153   :  { %s1581_s10 = scalar_lea.vmem %s1088_s4, 1024  ;;  %p1586_p11 = scmp.lt.s32.totalorder %s1088_s4, %s1088_s4 }
 0x154   :  { %v938_v11 = vmax.f32 %v908_v9, 0.0  ;;  %v911_v58 = vadd.f32 %v1307_v7, %v846_v10  ;;  %v1268_v12 = vpop.f32.mrb[20].mxu0  ;;  %p1582_p10 = scmp.ne.s32.totalorder %s1088_s4, %s1581_s10  ;;  %p1587_p12 = scmp.lt.s32.totalorder %s1581_s10, %s1581_s10 }
 0x155   :  { %v1308_v13 = vpop.f32.mrb[20].mxu1  ;;  %v1269_v14 = vpop.f32.mrb[21].mxu0 }
 0x156   :  { %v939_v15 = vmax.f32 %v911_v58, 0.0  ;;  %v1270_v16 = vadd.f32 %v1269_v14, %v1268_v12  ;;  %v1309_v17 = vpop.f32.mrb[21].mxu1  ;;  %v1271_v18 = vpop.f32.mrb[22].mxu0  ;;  %1382 = vmatprep.mubr.f32.mxu0 %v938_v11  ;;  %p1588_p13 = por %p1587_p12, %p1586_p11 }
 0x157   :  { %v1310_v19 = vadd.f32 %v1309_v17, %v1308_v13  ;;  %v1311_v20 = vpop.f32.mrb[22].mxu1  ;;  %v1272_v21 = vpop.f32.mrb[23].mxu0 }
 0x158   :  { %v851_v6 = vadd.f32 %v1270_v16, %v1692_v22  ;;  %v1273_v23 = vadd.f32 %v1272_v21, %v1271_v18  ;;  %v1312_v25 = vpop.f32.mrb[23].mxu1  ;;  %1383 = vmatmul.mubr.f32.vlgmr.msra.gmra.mrb[32].mxu0 %v939_v15  ;;  %p1589_p0 = pnand %p1588_p13, %p1582_p10 }
 0x159   :  { %v1313_v26 = vadd.f32 %v1312_v25, %v1311_v20 }
 0x15a   :  { %v916_v8 = vadd.f32 %v1310_v19, %v851_v6  ;;  %v854_v27 = vadd.f32 %v1273_v23, %v1694_v24 }
 0x15c   :  { %v940_v28 = vmax.f32 %v916_v8, 0.0  ;;  %v919_v29 = vadd.f32 %v1313_v26, %v854_v27  ;;  %v1274_v30 = vpop.f32.mrb[24].mxu0 }
 0x15d   :  { %v1314_v31 = vpop.f32.mrb[24].mxu1  ;;  %v1275_v32 = vpop.f32.mrb[25].mxu0 }
 0x15e   :  { %v941_v33 = vmax.f32 %v919_v29, 0.0  ;;  %v1276_v34 = vadd.f32 %v1275_v32, %v1274_v30  ;;  %v1315_v35 = vpop.f32.mrb[25].mxu1  ;;  %v1277_v36 = vpop.f32.mrb[26].mxu0  ;;  %1385 = vmatprep.mubr.f32.mxu0 %v940_v28 }
 0x15f   :  { %v1316_v37 = vadd.f32 %v1315_v35, %v1314_v31  ;;  %v1317_v39 = vpop.f32.mrb[26].mxu1  ;;  %v1278_v22 = vpop.f32.mrb[27].mxu0 }
 0x160   :  { %v859_v41 = vadd.f32 %v1276_v34, %v1696_v38  ;;  %v1279_v42 = vadd.f32 %v1278_v22, %v1277_v36  ;;  %v1318_v43 = vpop.f32.mrb[27].mxu1  ;;  %1386 = vmatmul.mubr.f32.gmra.mrb[34].mxu0 %v941_v33 }
 0x161   :  { %v1319_v44 = vadd.f32 %v1318_v43, %v1317_v39 }
 0x162   :  { %v924_v24 = vadd.f32 %v1316_v37, %v859_v41  ;;  %v862_v45 = vadd.f32 %v1279_v42, %v1698_v40 }
 0x164   :  { %v942_v46 = vmax.f32 %v924_v24, 0.0  ;;  %v927_v47 = vadd.f32 %v1319_v44, %v862_v45  ;;  %v1280_v48 = vpop.f32.mrb[28].mxu0 }
 0x165   :  { %v1320_v49 = vpop.f32.mrb[28].mxu1  ;;  %v1281_v50 = vpop.f32.mrb[29].mxu0 }
 0x166   :  { %v943_v51 = vmax.f32 %v927_v47, 0.0  ;;  %v1282_v52 = vadd.f32 %v1281_v50, %v1280_v48  ;;  %v1321_v53 = vpop.f32.mrb[29].mxu1  ;;  %v1283_v55 = vpop.f32.mrb[30].mxu0  ;;  %1388 = vmatprep.mubr.f32.mxu1 %v942_v46 }
 0x167   :  { %v1322_v57 = vadd.f32 %v1321_v53, %v1320_v49  ;;  %v1323_v59 = vpop.f32.mrb[30].mxu1  ;;  %v1284_v38 = vpop.f32.mrb[31].mxu0 }
 0x168   :  { %v867_v60 = vadd.f32 %v1282_v52, %v1700_v54  ;;  %v1285_v61 = vadd.f32 %v1284_v38, %v1283_v55  ;;  %v1324_v62 = vpop.f32.mrb[31].mxu1  ;;  %1389 = vmatmul.mubr.f32.vlgmr.msra.gmra.mrb[32].mxu1 %v943_v51 }
 0x169   :  { %v1325_v63 = vadd.f32 %v1324_v62, %v1323_v59 }
 0x16a   :  { %v932_v40 = vadd.f32 %v1322_v57, %v867_v60  ;;  %v870_v0 = vadd.f32 %v1285_v61, %v1702_v56 }
 0x16c   :  { %v944_v1 = vmax.f32 %v932_v40, 0.0  ;;  %v935_v2 = vadd.f32 %v1325_v63, %v870_v0 }
 0x16e   :  { %v945_v3 = vmax.f32 %v935_v2, 0.0  ;;  %1391 = vmatprep.mubr.f32.mxu1 %v944_v1 }
 0x170   :  { %1392 = vmatmul.mubr.f32.gmra.mrb[34].mxu1 %v945_v3 }
 0x22b   :  { %v1384_v5 = vpop.f32.mrb[32].mxu0 }
 0x22c   :  { %v1041_v7 = vadd.f32 %v1384_v5, %v1165_v4  ;;  %v1035_v9 = vpop.f32.mrb[33].mxu0 }
 0x22d   :  { %v1036_v54 = vadd.f32 %v1165_v4, %v1035_v9 }
 0x22e   :  { %1075 = vst [vmem:[#allocation8 + $0x8] sm:$0xff] %v1041_v7 }
 0x22f   :  { %1074 = vst [vmem:[#allocation8] sm:$0xff] %v1036_v54 }
 0x233   :  { %v1387_v10 = vpop.f32.mrb[34].mxu0 }
 0x234   :  { %v1051_v11 = vadd.f32 %v1387_v10, %v1165_v4  ;;  %v1045_v58 = vpop.f32.mrb[35].mxu0 }
 0x235   :  { %v1046_v12 = vadd.f32 %v1165_v4, %v1045_v58 }
 0x236   :  { %1077 = vst [vmem:[#allocation8 + $0x18] sm:$0xff] %v1051_v11 }
 0x237   :  { %1076 = vst [vmem:[#allocation8 + $0x10] sm:$0xff] %v1046_v12 }
 0x23b   :  { %v1390_v56 = vpop.f32.mrb[32].mxu1 }
 0x23c   :  { %v1061_v13 = vadd.f32 %v1390_v56, %v1165_v4  ;;  %v1055_v14 = vpop.f32.mrb[33].mxu1 }
 0x23d   :  { %v1056_v15 = vadd.f32 %v1165_v4, %v1055_v14 }
 0x23e   :  { %1079 = vst [vmem:[#allocation8 + $0x28] sm:$0xff] %v1061_v13 }
 0x23f   :  { %1078 = vst [vmem:[#allocation8 + $0x20] sm:$0xff] %v1056_v15 }
 0x243   :  { %v1393_v16 = vpop.f32.mrb[34].mxu1 }
 0x244   :  { %v1071_v17 = vadd.f32 %v1393_v16, %v1165_v4  ;;  %v1065_v18 = vpop.f32.mrb[35].mxu1 }
 0x245   :  { %v1066_v19 = vadd.f32 %v1165_v4, %v1065_v18 }
 0x246   :  { %1081 = vst [vmem:[#allocation8 + $0x38] sm:$0xff] %v1071_v17 }
 0x247   :  { %1080 = vst [vmem:[#allocation8 + $0x30] sm:$0xff] %v1066_v19 }
 0x248   :  { %1592 = shalt.err (!%p1589_p0)
}
 0x249   :  { %s1593_s13 = scalar_lea.hbm %s1734_s5, 1024 }
 0x24a   :  { %p1594_p1 = scmp.ne.s32.totalorder %s1734_s5, %s1593_s13  ;;  %p1597_p2 = scmp.lt.u32.totalorder %s1593_s13, %s1734_s5 }
 0x24c   :  { %p1599_p3 = pnand %p1597_p2, %p1594_p1 }
 0x24e   :  { %1602 = shalt.err (!%p1599_p3)
}
 0x24f   :  { %1093 = dma.vmem_to_hbm [thread:$0]  %s1088_s4, 1024, %s1734_s5, [#allocation4], %s1615_s0, %s1615_s0, %s1616_s28  }
 0x250   :  { %1607 = dma.done.wait [#allocation4], 1024  }
 0x251   :  { %1608 = vsyncadd [#allocation4], 4294966272 }
 0x252   :  { %1097 = vsyncpa [#allocation3], 1 }
 0x253   :  { %1098 = vsyncpa [#allocation6], 1 }
 0x254   :  { %1099 = vsyncpa [#allocation4], 1 }

</bundles_post_ra>
